<compile_context>
chip_gen: v7x
topology: tpu7x:2x2x1
jax: 0.10.0
libtpu: 0.0.40
codegen_flags: <defaults>
</compile_context>

<pallas_src>
import jax
import jax.numpy as jnp
from jax import lax
from jax.experimental import pallas as pl
from jax.experimental.pallas import tpu as pltpu


# ----------------------------------------------------------------------------
# helpers
# ----------------------------------------------------------------------------

def _round_up(x, m):
    return ((x + m - 1) // m) * m


def _pick_tile(total, target, align):
    """Largest multiple of `align` that divides `total` and is <= target."""
    t = max(align, (min(target, total) // align) * align)
    while total % t:
        t -= align
    return t


def _tpu_vmem_cap_bytes():
    # Per-generation cap (review): ~3/4 of physical VMEM -> ~96 MiB on 128 MiB parts
    # (v5e/v6e), ~48 MiB on 64 MiB parts (v7x).
    try:
        phys = int(pltpu.get_tpu_info().vmem_capacity_bytes)
    except Exception:
        phys = 64 << 20
    return max((phys * 3) // 4, 16 << 20)


def prepare_rhs_eval(ent_emb, bt_all, *, compute_dtype=jnp.bfloat16, tile_e=2048):
    """Pad + cast the eval-mode targets ONCE (not per eval call).

    ent_emb (N, R) -> (N_pad, R_pad) in compute_dtype (R padded to a multiple of 128,
    N padded to a multiple of the entity tile).  bt_all (N, 1) -> lane-dense (1, N_pad)
    float32 row.  Returns (ent_pad, bt_row, tile_e_used).
    """
    n, r = ent_emb.shape
    r_pad = _round_up(r, 128)
    te = tile_e if n >= tile_e else _round_up(n, 128)
    n_pad = _round_up(n, te)
    ent = jnp.pad(ent_emb, ((0, n_pad - n), (0, r_pad - r))).astype(compute_dtype)
    bt_row = jnp.pad(bt_all.astype(jnp.float32),
                     ((0, n_pad - n), (0, 0))).reshape(1, n_pad)
    return ent, bt_row, te


# ----------------------------------------------------------------------------
# Pallas kernels
# ----------------------------------------------------------------------------

def _eval_score_kernel(lhs_ref, bh_ref, rhs_ref, bt_ref, o_ref):
    """One (query-tile x entity-tile) block of eval-mode scoring.

    lhs_ref: (TQ, Rp)  query embeddings tile (compute dtype)
    bh_ref : (TQ, 1)   head biases tile (f32)
    rhs_ref: (TE, Rp)  entity-table tile (resident across the inner query axis)
    bt_ref : (1, TE)   tail biases tile (lane-dense f32 row)
    o_ref  : (TQ, TE)  scores = lhs @ rhs^T + bh + bt, cast to o_ref.dtype
    """
    sim = lax.dot_general(
        lhs_ref[...], rhs_ref[...],
        dimension_numbers=(((1,), (1,)), ((), ())),   # contract last axes, no transpose
        preferred_element_type=jnp.float32)
    o_ref[...] = (sim + bh_ref[...] + bt_ref[...]).astype(o_ref.dtype)


def _train_score_kernel(lhs_ref, rhs_ref, bh_ref, bt_ref, o_ref):
    """Train-mode tile, lane-dense layout: queries along lanes.

    lhs_ref/rhs_ref: (R, TQ), bh_ref/bt_ref: (1, TQ), o_ref: (1, TQ).
    """
    prod = lhs_ref[...] * rhs_ref[...]             # VPU elementwise
    sim = jnp.sum(prod, axis=0, keepdims=True)     # reduce over rank -> (1, TQ)
    o_ref[...] = sim + bh_ref[...] + bt_ref[...]


# ----------------------------------------------------------------------------
# wrappers
# ----------------------------------------------------------------------------

def eval_score(lhs_e, bh_q, rhs_pad, bt_row, *, n_entities, tile_q=512, tile_e=2048,
               out_dtype=jnp.float32):
    """Scores every query against every entity.

    lhs_e  : (Q, R)          query embeddings (cast to rhs_pad.dtype inside)
    bh_q   : (Q, 1)          head biases
    rhs_pad: (N_pad, R_pad)  entity table, pre-padded + pre-cast (prepare_rhs_eval)
    bt_row : (1, N_pad)      tail biases, lane-dense, pre-padded
    Returns (Q, n_entities) scores in out_dtype (f32 accumulation in the MXU either way).
    """
    Q, R = lhs_e.shape
    n_pad, r_pad = rhs_pad.shape
    compute_dtype = rhs_pad.dtype

    # query tiles: multiple of 16 (bf16 sublane packing); minimal padding of Q
    q_pad = _round_up(Q, 16)
    tile_q = _pick_tile(q_pad, tile_q, 16)
    tile_e = _pick_tile(n_pad, tile_e, 128)

    lhs = jnp.pad(lhs_e, ((0, q_pad - Q), (0, r_pad - R))).astype(compute_dtype)
    bh = jnp.pad(bh_q.astype(jnp.float32), ((0, q_pad - Q), (0, 0)))

    # entity axis OUTER, query axis INNER: rhs tile index_map depends only on `e`
    # -> the (tile_e, r_pad) entity tile stays resident across all query tiles.
    grid = (n_pad // tile_e, q_pad // tile_q)

    cd = jnp.dtype(compute_dtype).itemsize
    od = jnp.dtype(out_dtype).itemsize
    tile_bytes = (tile_q * r_pad * cd        # lhs tile
                  + tile_q * 4               # bh tile
                  + tile_e * r_pad * cd      # rhs tile
                  + tile_e * 4               # bt tile
                  + tile_q * tile_e * od)    # output tile
    vmem_bytes = int(min(max(2 * tile_bytes + (4 << 20), 16 << 20),
                         _tpu_vmem_cap_bytes()))

    out = pl.pallas_call(
        _eval_score_kernel,
        out_shape=jax.ShapeDtypeStruct((q_pad, n_pad), out_dtype),
        grid_spec=pltpu.PrefetchScalarGridSpec(
            num_scalar_prefetch=0,
            grid=grid,
            in_specs=[
                pl.BlockSpec((tile_q, r_pad), lambda e, q: (q, 0)),   # lhs tile
                pl.BlockSpec((tile_q, 1), lambda e, q: (q, 0)),       # head bias tile
                pl.BlockSpec((tile_e, r_pad), lambda e, q: (e, 0)),   # entity tile (resident over q)
                pl.BlockSpec((1, tile_e), lambda e, q: (0, e)),       # tail bias row tile
            ],
            out_specs=pl.BlockSpec((tile_q, tile_e), lambda e, q: (q, e)),
        ),
        # entity axis parallel (megacore splits entity stream across v7x's 2 TCs),
        # query axis arbitrary (sequential -> per-core rhs-tile residency preserved).
        compiler_params=pltpu.CompilerParams(
            dimension_semantics=("parallel", "arbitrary"),
            vmem_limit_bytes=vmem_bytes),
    )(lhs, bh, rhs_pad, bt_row)
    return out[:Q, :n_entities]


def train_score(lhs_e, rhs_e, bh_q, bt_q, *, tile_q=2048):
    """Per-triple scores. (Q,R),(Q,R),(Q,1),(Q,1) -> (Q,1) float32.

    Lane-dense formulation: inputs transposed to (R, Q) so the output is a (1, Q)
    row (unmasked lane-dense stores) instead of a (Q, 1) column of vst.msk stores.
    """
    Q, R = lhs_e.shape
    q_pad = _round_up(Q, 128)
    tile_q = _pick_tile(q_pad, tile_q, 128)

    lhsT = jnp.pad(lhs_e.astype(jnp.float32).T, ((0, 0), (0, q_pad - Q)))
    rhsT = jnp.pad(rhs_e.astype(jnp.float32).T, ((0, 0), (0, q_pad - Q)))
    bh_row = jnp.pad(bh_q.astype(jnp.float32).T, ((0, 0), (0, q_pad - Q)))
    bt_row = jnp.pad(bt_q.astype(jnp.float32).T, ((0, 0), (0, q_pad - Q)))

    # TODO(synk): for very large Q this pure-VPU path could simply be left to XLA fusion
    # (review option 1); kept as a lane-dense Pallas kernel so the score path is uniform.
    out = pl.pallas_call(
        _train_score_kernel,
        out_shape=jax.ShapeDtypeStruct((1, q_pad), jnp.float32),
        grid_spec=pltpu.PrefetchScalarGridSpec(
            num_scalar_prefetch=0,
            grid=(q_pad // tile_q,),
            in_specs=[
                pl.BlockSpec((R, tile_q), lambda i: (0, i)),
                pl.BlockSpec((R, tile_q), lambda i: (0, i)),
                pl.BlockSpec((1, tile_q), lambda i: (0, i)),
                pl.BlockSpec((1, tile_q), lambda i: (0, i)),
            ],
            out_specs=pl.BlockSpec((1, tile_q), lambda i: (0, i)),
        ),
        compiler_params=pltpu.CompilerParams(
            dimension_semantics=("parallel",)),
    )(lhsT, rhsT, bh_row, bt_row)
    return out[0, :Q].reshape(Q, 1)


# ----------------------------------------------------------------------------
# KGModel in JAX (parameters + glue); hot path dispatched to Pallas kernels
# ----------------------------------------------------------------------------

class KGModelJax:
    def __init__(self, sizes, rank, gamma, bias, init_size, key,
                 eval_compute_dtype=jnp.bfloat16,   # bf16 streaming by default (f32 accumulate)
                 eval_out_dtype=jnp.float32,        # set bf16 to halve (Q,N) score writeback
                 eval_tile_e=2048):
        self.sizes = sizes
        self.rank = rank
        self.bias = bias
        self.gamma = jnp.array([gamma], dtype=jnp.float32)
        self.eval_compute_dtype = eval_compute_dtype
        self.eval_out_dtype = eval_out_dtype
        self._eval_tile_e = eval_tile_e
        k1, k2 = jax.random.split(key)
        # nn.Embedding default init is N(0,1); subclasses scale by init_size.
        self.entity = init_size * jax.random.normal(
            k1, (sizes[0], rank), dtype=jnp.float32)
        self.rel = init_size * jax.random.normal(
            k2, (sizes[1], rank), dtype=jnp.float32)
        self.bh = jnp.zeros((sizes[0], 1), dtype=jnp.float32)
        self.bt = jnp.zeros((sizes[0], 1), dtype=jnp.float32)
        # Cached eval-mode shadow of get_rhs(eval_mode=True): the (N,R) entity table and
        # (N,1) tail bias padded (N -> tile multiple, R -> 128 multiple) and cast ONCE
        # instead of on every eval call.  Call refresh_eval_cache() after any update of
        # entity/bt if the embeddings are trained.
        self.refresh_eval_cache()

    def refresh_eval_cache(self):
        self._ent_eval, self._bt_eval_row, self._tile_e = prepare_rhs_eval(
            self.entity, self.bt, compute_dtype=self.eval_compute_dtype,
            tile_e=self._eval_tile_e)

    # --- concrete realizations of the abstract hooks (DistMult-style) -------
    def get_queries(self, queries):
        head_e = jnp.take(self.entity, queries[:, 0], axis=0)
        rel_e = jnp.take(self.rel, queries[:, 1], axis=0)
        lhs_e = head_e * rel_e
        lhs_biases = jnp.take(self.bh, queries[:, 0], axis=0)
        return lhs_e, lhs_biases

    def get_rhs(self, queries, eval_mode):
        if eval_mode:
            return self.entity, self.bt
        rhs_e = jnp.take(self.entity, queries[:, 2], axis=0)
        rhs_biases = jnp.take(self.bt, queries[:, 2], axis=0)
        return rhs_e, rhs_biases

    def get_factors(self, queries):
        head_e = jnp.take(self.entity, queries[:, 0], axis=0)
        rel_e = jnp.take(self.rel, queries[:, 1], axis=0)
        rhs_e = jnp.take(self.entity, queries[:, 2], axis=0)
        return head_e, rel_e, rhs_e

    # --- score / forward (bias='learn' fused inside the kernels) ------------
    def score(self, lhs, rhs, eval_mode):
        lhs_e, lhs_biases = lhs
        rhs_e, rhs_biases = rhs
        learn = self.bias == 'learn'
        if eval_mode:
            # get_rhs(eval_mode=True) always returns (self.entity, self.bt); use the
            # cached padded/cast shadow of that same data (no per-call pad/cast).
            bh = lhs_biases if learn else jnp.zeros_like(lhs_biases)
            bt_row = self._bt_eval_row if learn else jnp.zeros_like(self._bt_eval_row)
            scores = eval_score(lhs_e, bh, self._ent_eval, bt_row,
                                n_entities=self.sizes[0],
                                tile_e=self._tile_e,
                                out_dtype=self.eval_out_dtype)
        else:
            bh = lhs_biases if learn else jnp.zeros_like(lhs_biases)
            bt = rhs_biases if learn else jnp.zeros_like(rhs_biases)
            scores = train_score(lhs_e, rhs_e, bh, bt)
        if self.bias == 'constant':
            return self.gamma[0] + scores
        return scores

    def forward(self, queries, eval_mode=False):
        lhs_e, lhs_biases = self.get_queries(queries)
        rhs_e, rhs_biases = self.get_rhs(queries, eval_mode)
        predictions = self.score((lhs_e, lhs_biases), (rhs_e, rhs_biases),
                                 eval_mode)
        factors = self.get_factors(queries)
        return predictions, factors


# ----------------------------------------------------------------------------
# main
# ----------------------------------------------------------------------------

if __name__ == "__main__":
    key = jax.random.PRNGKey(0)
    n_entities, n_relations, rank = 256, 16, 128
    n_queries = 8

    model = KGModelJax(sizes=(n_entities, n_relations, n_entities),
                       rank=rank, gamma=0.0, bias='learn',
                       init_size=1e-1, key=key)

    kq = jax.random.split(key, 4)
    heads = jax.random.randint(kq[1], (n_queries,), 0, n_entities)
    rels = jax.random.randint(kq[2], (n_queries,), 0, n_relations)
    tails = jax.random.randint(kq[3], (n_queries,), 0, n_entities)
    queries = jnp.stack([heads, rels, tails], axis=1).astype(jnp.int32)

    # eval mode: (n_queries, n_entities); default path streams entity table in bf16
    preds_eval, factors = model.forward(queries, eval_mode=True)
    preds_eval = jax.block_until_ready(preds_eval)

    # train mode: (n_queries, 1)
    preds_train, _ = model.forward(queries, eval_mode=False)
    preds_train = jax.block_until_ready(preds_train)

    # reference check against plain-JAX math
    lhs_e, bh_q = model.get_queries(queries)
    ref_eval = lhs_e @ model.entity.T + bh_q + model.bt.T
    rhs_e = jnp.take(model.entity, queries[:, 2], axis=0)
    bt_q = jnp.take(model.bt, queries[:, 2], axis=0)
    ref_train = jnp.sum(lhs_e * rhs_e, axis=-1, keepdims=True) + bh_q + bt_q

    assert preds_eval.shape == (n_queries, n_entities)
    assert preds_train.shape == (n_queries, 1)
    # default eval path uses bf16 streaming (f32 accumulation) -> loose tolerance
    assert jnp.allclose(preds_eval, ref_eval, atol=2e-2, rtol=5e-2)
    assert jnp.allclose(preds_train, ref_train, atol=1e-4, rtol=1e-4)
    assert factors[0].shape == (n_queries, rank)

    # exact f32 check of the eval kernel math (f32 shadow copy, f32 output)
    ent_f32, btrow_f32, te_f32 = prepare_rhs_eval(
        model.entity, model.bt, compute_dtype=jnp.float32)
    preds_f32 = jax.block_until_ready(
        eval_score(lhs_e, bh_q, ent_f32, btrow_f32,
                   n_entities=n_entities, tile_e=te_f32))
    assert jnp.allclose(preds_f32, ref_eval, atol=1e-4, rtol=1e-4)

    # bf16 OUTPUT variant (halves the dominant (Q, N) HBM writeback stream)
    preds_b16o = jax.block_until_ready(
        eval_score(lhs_e, bh_q, model._ent_eval, model._bt_eval_row,
                   n_entities=n_entities, tile_e=model._tile_e,
                   out_dtype=jnp.bfloat16))
    assert preds_b16o.dtype == jnp.bfloat16
    assert jnp.allclose(preds_b16o.astype(jnp.float32), ref_eval,
                        atol=2e-2, rtol=5e-2)

    # ragged-shape path: rank=64 (zero-padded to 128 in the cached shadow) and
    # 200 entities (padded to 256); exact f32 eval to check the padding is lossless.
    model2 = KGModelJax(sizes=(200, 12, 200), rank=64, gamma=0.0, bias='learn',
                        init_size=1e-1, key=jax.random.PRNGKey(1),
                        eval_compute_dtype=jnp.float32)
    kq2 = jax.random.split(jax.random.PRNGKey(2), 3)
    q2 = jnp.stack([jax.random.randint(kq2[0], (5,), 0, 200),
                    jax.random.randint(kq2[1], (5,), 0, 12),
                    jax.random.randint(kq2[2], (5,), 0, 200)],
                   axis=1).astype(jnp.int32)
    p2, _ = model2.forward(q2, eval_mode=True)
    p2 = jax.block_until_ready(p2)
    l2, b2 = model2.get_queries(q2)
    ref2 = l2 @ model2.entity.T + b2 + model2.bt.T
    assert p2.shape == (5, 200)
    assert jnp.allclose(p2, ref2, atol=1e-4, rtol=1e-4)

    p2t, _ = model2.forward(q2, eval_mode=False)
    p2t = jax.block_until_ready(p2t)
    r2e = jnp.take(model2.entity, q2[:, 2], axis=0)
    bt2 = jnp.take(model2.bt, q2[:, 2], axis=0)
    ref2t = jnp.sum(l2 * r2e, axis=-1, keepdims=True) + b2 + bt2
    assert p2t.shape == (5, 1)
    assert jnp.allclose(p2t, ref2t, atol=1e-4, rtol=1e-4)

    print("KERNEL_OK")
</pallas_src>

<mosaic_0001>
module attributes {stable_mosaic.version = 11 : i64} {
  func.func @_eval_score_kernel(%arg0: i32, %arg1: i32, %arg2: memref<16x128xbf16, #tpu.memory_space<vmem>>, %arg3: memref<16x1xf32, #tpu.memory_space<vmem>>, %arg4: memref<256x128xbf16, #tpu.memory_space<vmem>>, %arg5: memref<1x256xf32, #tpu.memory_space<vmem>>, %arg6: memref<16x256xf32, #tpu.memory_space<vmem>>) attributes {dimension_semantics = [#tpu.dimension_semantics<parallel>, #tpu.dimension_semantics<arbitrary>], iteration_bounds = array<i64: 1, 1>, scalar_prefetch = 0 : i64, scratch_operands = 0 : i64, tpu.core_type = #tpu.core_type<tc>, window_params = [{transform_indices = @transform_0, window_bounds = array<i64: 16, 128>}, {transform_indices = @transform_1, window_bounds = array<i64: 16, 1>}, {transform_indices = @transform_2, window_bounds = array<i64: 256, 128>}, {transform_indices = @transform_3, window_bounds = array<i64: 1, 256>}, {transform_indices = @transform_4, window_bounds = array<i64: 16, 256>}]} {
    %c0 = arith.constant 0 : index
    %c0_0 = arith.constant 0 : index
    %0 = vector.load %arg2[%c0, %c0_0] : memref<16x128xbf16, #tpu.memory_space<vmem>>, vector<16x128xbf16>
    %c0_1 = arith.constant 0 : index
    %c0_2 = arith.constant 0 : index
    %1 = vector.load %arg4[%c0_1, %c0_2] : memref<256x128xbf16, #tpu.memory_space<vmem>>, vector<256x128xbf16>
    %cst = arith.constant dense<0.000000e+00> : vector<16x256xf32>
    %2 = tpu.matmul %0, %1, %cst {dimension_numbers = #tpu.dot_dimension_numbers<[1], [1], [0], [0], [0, 0, 1, 0], [], []>} : vector<16x128xbf16>, vector<256x128xbf16>, vector<16x256xf32> -> vector<16x256xf32>
    %c0_3 = arith.constant 0 : index
    %c0_4 = arith.constant 0 : index
    %3 = vector.load %arg3[%c0_3, %c0_4] : memref<16x1xf32, #tpu.memory_space<vmem>>, vector<16x1xf32>
    %4 = vector.broadcast %3 : vector<16x1xf32> to vector<16x256xf32>
    %5 = arith.addf %2, %4 : vector<16x256xf32>
    %c0_5 = arith.constant 0 : index
    %c0_6 = arith.constant 0 : index
    %6 = vector.load %arg5[%c0_5, %c0_6] : memref<1x256xf32, #tpu.memory_space<vmem>>, vector<1x256xf32>
    %7 = vector.broadcast %6 : vector<1x256xf32> to vector<16x256xf32>
    %8 = arith.addf %5, %7 : vector<16x256xf32>
    %c0_7 = arith.constant 0 : index
    %c0_8 = arith.constant 0 : index
    %9 = vector.load %arg6[%c0_7, %c0_8] : memref<16x256xf32, #tpu.memory_space<vmem>>, vector<16x256xf32>
    tpu.vector_store %arg6[%c0_7, %c0_8], %8 {strides = array<i32>} : memref<16x256xf32, #tpu.memory_space<vmem>>, vector<16x256xf32>,
    return
  }
  func.func @transform_0(%arg0: i32, %arg1: i32) -> (i32, i32) {
    %c0_i32 = arith.constant 0 : i32
    %c0_i32_0 = arith.constant 0 : i32
    return %arg1, %c0_i32 : i32, i32
  }
  func.func @transform_1(%arg0: i32, %arg1: i32) -> (i32, i32) {
    %c0_i32 = arith.constant 0 : i32
    %c0_i32_0 = arith.constant 0 : i32
    return %arg1, %c0_i32 : i32, i32
  }
  func.func @transform_2(%arg0: i32, %arg1: i32) -> (i32, i32) {
    %c0_i32 = arith.constant 0 : i32
    %c0_i32_0 = arith.constant 0 : i32
    return %arg0, %c0_i32 : i32, i32
  }
  func.func @transform_3(%arg0: i32, %arg1: i32) -> (i32, i32) {
    %c0_i32 = arith.constant 0 : i32
    %c0_i32_0 = arith.constant 0 : i32
    return %c0_i32, %arg0 : i32, i32
  }
  func.func @transform_4(%arg0: i32, %arg1: i32) -> (i32, i32) {
    %c0_i32 = arith.constant 0 : i32
    return %arg1, %arg0 : i32, i32
  }
}

</mosaic_0001>

<bundles_post_ra>
// kernel: tpu_custom_call.1
= control target key start
LH: loop header
LB: loop body
LE: loop exit
PB: predicated region body
PF: predicated region fallthrough
CT: control target
= control target key end

     0   :  { %9 = vsyncpa [#allocation3], 0  ;;  %s437_s0 = inlined_call_operand.vmem [shape: bf16[16,128], index: 0, kind: input, shape index: {}]   ;;  %s438_s1 = inlined_call_operand.vmem [shape: f32[16,1], index: 1, kind: input, shape index: {}]   ;;  %s439_s2 = inlined_call_operand.hbm [shape: bf16[256,128], index: 2, kind: input, shape index: {}]   ;;  %s440_s3 = inlined_call_operand.vmem [shape: f32[1,256], index: 3, kind: input, shape index: {}]   ;;  %s441_s4 = inlined_call_operand.hbm [shape: f32[16,256], index: 4, kind: output, shape index: {}]  }
   0x1   :  { %10 = vsyncpa [#allocation4], 0  ;;  %s369_s15 = smov [#allocation2]   ;;  %s321_s19 = scalar_lea.hbm %s439_s2, 2048 }
   0x2   :  { %s20_s16 = sshll.u32 %s369_s15, 4  ;;  %p322_p0 = scmp.ne.s32.totalorder %s439_s2, %s321_s19  ;;  %s21_s16 = int_to_ptr.vmem [resolvable:$true] %s20_s16 }
   0x3   :  { %p325_p1 = scmp.lt.u32.totalorder %s321_s19, %s439_s2 }
   0x5   :  { %p327_p2 = pnand %p325_p1, %p322_p0 }
   0x7   :  { %330 = shalt.err (!%p327_p2)
}
   0x8   :  { %s331_s24 = scalar_lea.vmem %s21_s16, 2048  ;;  %p336_p4 = scmp.lt.s32.totalorder %s21_s16, %s21_s16 }
   0x9   :  { %p332_p3 = scmp.ne.s32.totalorder %s21_s16, %s331_s24  ;;  %p337_p5 = scmp.lt.s32.totalorder %s331_s24, %s331_s24 }
   0xb   :  { %p338_p6 = por %p337_p5, %p336_p4 }
   0xd   :  { %p339_p7 = pnand %p338_p6, %p332_p3 }
   0xf   :  { %342 = shalt.err (!%p339_p7)
}
  0x10   :  { %s370_s25 = smov 64   ;;  %s371_s26 = smov 4  }
  0x11   :  { %26 = dma.hbm_to_vmem [thread:$0]  %s439_s2, 2048, %s21_s16, [#allocation3], %s370_s25, %s370_s25, %s371_s26  }
  0x12   :  { %365 = dma.done.wait [#allocation3], 2048  }
  0x13   :  { %366 = vsyncadd [#allocation3], 4294965248  ;;  %v372_v0 = vmov 0   ;;  %v304_v1 = vld [vmem:[#allocation2 + $0x40] sm:$0xff]   ;;  %v306_v3 = vld [vmem:[#allocation2 + $0x48] sm:$0xff]   ;;  %v226_v20 = vlaneseq  ;;  %s373_s8 = smov [#allocation5]  }
  0x14   :  { %303 = vset.pattern.permute.xlu0 %v372_v0  ;;  %v305_v2 = vld [vmem:[#allocation2] sm:$0xff]   ;;  %278 = vmatprep.subr.bf16.mxu0 %v304_v1  ;;  %v307_v4 = vld [vmem:[#allocation2 + $0x8] sm:$0xff]   ;;  %v308_v5 = vld [vmem:[#allocation2 + $0x50] sm:$0xff]   ;;  %s249_s9 = sshll.u32 %s373_s8, 4  ;;  %s250_s9 = int_to_ptr.vmem [resolvable:$true] %s249_s9 }
  0x15   :  { %279 = vmatpush3.bf16.xpose.msra.mxu0 %v305_v2  ;;  %v309_v6 = vld [vmem:[#allocation2 + $0x10] sm:$0xff]   ;;  %v310_v7 = vld [vmem:[#allocation2 + $0x58] sm:$0xff]   ;;  %v320_v8 = vld [vmem:[%s437_s0] sm:$0xff]   ;;  %v227_v21 = vshrl.u32 %v226_v20, 7  ;;  %p348_p9 = scmp.lt.s32.totalorder %s250_s9, %s250_s9 }
  0x16   :  { %280 = vmatprep.subr.bf16.mxu0 %v306_v3  ;;  %v67_v9 = vld [vmem:[%s438_s1] sm:$0xff]  ;;  %294 = vmatprep.mubr.bf16.mxu0 %v320_v8  ;;  %v68_v10 = vld [vmem:[%s438_s1 + $0x8] sm:$0xff]  ;;  %v311_v11 = vld [vmem:[#allocation2 + $0x18] sm:$0xff]  }
  0x17   :  { %71 = vperm.xlu0 %303, %v67_v9   ;;  %v312_v12 = vld [vmem:[#allocation2 + $0x60] sm:$0xff]   ;;  %v314_v14 = vld [vmem:[#allocation2 + $0x68] sm:$0xff]   ;;  %v316_v16 = vld [vmem:[#allocation2 + $0x70] sm:$0xff]   ;;  %v228_v22 = vsub.s32 0, %v227_v21  ;;  %v232_v25 = vsub.s32 1, %v227_v21 }
  0x18   :  { %v313_v13 = vld [vmem:[#allocation2 + $0x20] sm:$0xff]   ;;  %v315_v15 = vld [vmem:[#allocation2 + $0x28] sm:$0xff]   ;;  %v317_v17 = vld [vmem:[#allocation2 + $0x30] sm:$0xff]  }
  0x19   :  { %v318_v18 = vld [vmem:[#allocation2 + $0x78] sm:$0xff]   ;;  %v224_v24 = vld [vmem:[%s440_s3] sm:$0x3]  ;;  %s343_s3 = scalar_lea.vmem %s250_s9, 512 }
  0x1a   :  { %v319_v19 = vld [vmem:[#allocation2 + $0x38] sm:$0xff]   ;;  %v229_v26 = vrot.slane %v224_v24, %v228_v22  ;;  %v233_v28 = vrot.slane %v224_v24, %v232_v25  ;;  %p344_p8 = scmp.ne.s32.totalorder %s250_s9, %s343_s3  ;;  %p349_p10 = scmp.lt.s32.totalorder %s343_s3, %s343_s3 }
  0x1b   :  { %76 = vperm.xlu0 %303, %v68_v10  }
  0x1c   :  { %p350_p11 = por %p349_p10, %p348_p9 }
  0x1d   :  { %281 = vmatpush3.bf16.xpose.msra.mxu0 %v307_v4 }
  0x1e   :  { %282 = vmatprep.subr.bf16.mxu0 %v308_v5  ;;  %p351_p12 = pnand %p350_p11, %p344_p8 }
  0x25   :  { %283 = vmatpush3.bf16.xpose.msra.mxu0 %v309_v6 }
  0x26   :  { %284 = vmatprep.subr.bf16.mxu0 %v310_v7 }
  0x2d   :  { %285 = vmatpush3.bf16.xpose.msra.mxu0 %v311_v11 }
  0x2e   :  { %286 = vmatprep.subr.bf16.mxu0 %v312_v12 }
  0x35   :  { %287 = vmatpush3.bf16.xpose.msra.mxu0 %v313_v13 }
  0x36   :  { %288 = vmatprep.subr.bf16.mxu0 %v314_v14 }
  0x3d   :  { %289 = vmatpush3.bf16.xpose.msra.mxu0 %v315_v15 }
  0x3e   :  { %290 = vmatprep.subr.bf16.mxu0 %v316_v16 }
  0x45   :  { %291 = vmatpush3.bf16.xpose.msra.mxu0 %v317_v17 }
  0x46   :  { %292 = vmatprep.subr.bf16.mxu0 %v318_v18 }
  0x4d   :  { %293 = vmatpush3.bf16.xpose.msra.mxu0 %v319_v19 }
  0x54   :  { %295 = vmatmul.mubr.bf16.vlgmr.msra.gmra.mrb[0].mxu0 %v320_v8 }
  0x96   :  { %v72_v23 = vpop.permute.xlu0 %71 }
  0x9a   :  { %v77_v31 = vpop.permute.xlu0 %76 }
 0x127   :  { %v215_v27 = vpop.f32.mrb[0].mxu0 }
 0x128   :  { %v216_v29 = vadd.f32 %v215_v27, %v72_v23  ;;  %v217_v30 = vpop.f32.mrb[1].mxu0 }
 0x129   :  { %v218_v32 = vadd.f32 %v217_v30, %v72_v23  ;;  %v219_v33 = vpop.f32.mrb[2].mxu0 }
 0x12a   :  { %v236_v34 = vadd.f32 %v229_v26, %v216_v29  ;;  %v220_v35 = vadd.f32 %v219_v33, %v77_v31  ;;  %v221_v36 = vpop.f32.mrb[3].mxu0 }
 0x12b   :  { %v237_v37 = vadd.f32 %v233_v28, %v218_v32  ;;  %v222_v38 = vadd.f32 %v221_v36, %v77_v31 }
 0x12c   :  { %240 = vst [vmem:[#allocation5] sm:$0xff] %v236_v34  ;;  %v238_v39 = vadd.f32 %v229_v26, %v220_v35 }
 0x12d   :  { %241 = vst [vmem:[#allocation5 + $0x8] sm:$0xff] %v237_v37  ;;  %v239_v40 = vadd.f32 %v233_v28, %v222_v38 }
 0x12e   :  { %242 = vst [vmem:[#allocation5 + $0x10] sm:$0xff] %v238_v39 }
 0x12f   :  { %243 = vst [vmem:[#allocation5 + $0x18] sm:$0xff] %v239_v40 }
 0x130   :  { %354 = shalt.err (!%p351_p12)
}
 0x131   :  { %s355_s12 = scalar_lea.hbm %s441_s4, 512 }
 0x132   :  { %p356_p13 = scmp.ne.s32.totalorder %s441_s4, %s355_s12  ;;  %p359_p0 = scmp.lt.u32.totalorder %s355_s12, %s441_s4 }
 0x134   :  { %p361_p1 = pnand %p359_p0, %p356_p13 }
 0x136   :  { %364 = shalt.err (!%p361_p1)
}
 0x137   :  { %s374_s17 = smov 256   ;;  %s375_s18 = smov 16  }
 0x138   :  { %255 = dma.vmem_to_hbm [thread:$0]  %s250_s9, 512, %s441_s4, [#allocation4], %s374_s17, %s374_s17, %s375_s18  }
 0x139   :  { %367 = dma.done.wait [#allocation4], 512  }
 0x13a   :  { %368 = vsyncadd [#allocation4], 4294966784 }
 0x13b   :  { %259 = vsyncpa [#allocation3], 1 }
 0x13c   :  { %260 = vsyncpa [#allocation4], 1 }

</bundles_post_ra>
